<compile_context>
chip_gen: v6e
topology: v6e:2x2x1
jax: 0.10.0
libtpu: 0.0.40
codegen_flags: <defaults>
</compile_context>

<pallas_src>
import jax
import jax.numpy as jnp
from jax.experimental import pallas as pl
from jax.experimental.pallas import tpu as pltpu

_LANE = 128
_TILE_BYTES_TARGET = 2 * 1024 * 1024  # ~2 MiB per tile -> ~8 MiB VMEM double-buffered


def _copy_kernel(x_ref, o_ref):
    # Identity copy of the current (tile_rows, cols) block.
    o_ref[...] = x_ref[...]


def _sublane_multiple(dtype) -> int:
    # f32 -> 8, bf16/f16 -> 16, int8/fp8 -> 32 rows per sublane tile.
    return {4: 8, 2: 16, 1: 32}.get(jnp.dtype(dtype).itemsize, 8)


def _lane_dense_view(n: int, c: int) -> tuple[int, int]:
    """Pick a 2-D view of the (N, C) data whose last dim is lane-dense when possible."""
    if c % _LANE == 0:
        return n, c
    total = n * c
    if total % _LANE == 0:
        return total // _LANE, _LANE  # collapse tiny C into full 128-lane rows
    return n, c  # tiny / odd shapes: a single full block is fine


def _pick_tile_rows(rows: int, cols: int, itemsize: int, sublane: int) -> int:
    t = max(1, _TILE_BYTES_TARGET // max(1, cols * itemsize))
    t = min(t, rows)
    if t < rows:
        # When tiling, the (second-to-last) block dim must be a sublane multiple.
        t = max(sublane, (t // sublane) * sublane)
    return t


def vec2vol(x: jax.Array) -> jax.Array:
    """Vec2Vol.forward: (N, C) -> (N, C, 1, 1). Metadata-only — zero HBM traffic."""
    n, c = x.shape
    return x.reshape(n, c, 1, 1)


def vec2vol_pallas(x: jax.Array) -> jax.Array:
    """Materializing Vec2Vol: tiled, pipelined Pallas copy + metadata reshape."""
    assert x.ndim == 2, "Vec2Vol expects a (N, C) vector batch"
    n, c = x.shape

    rows, cols = _lane_dense_view(n, c)
    x2d = x.reshape(rows, cols)

    sublane = _sublane_multiple(x.dtype)
    tile_rows = _pick_tile_rows(rows, cols, jnp.dtype(x.dtype).itemsize, sublane)
    grid = (pl.cdiv(rows, tile_rows),)

    copied = pl.pallas_call(
        _copy_kernel,
        out_shape=jax.ShapeDtypeStruct((rows, cols), x.dtype),
        grid_spec=pltpu.PrefetchScalarGridSpec(
            num_scalar_prefetch=0,
            grid=grid,
            in_specs=[pl.BlockSpec((tile_rows, cols), lambda i: (i, 0))],
            out_specs=pl.BlockSpec((tile_rows, cols), lambda i: (i, 0)),
        ),
        compiler_params=pltpu.CompilerParams(
            # Row tiles are independent -> shard across v7x's 2 TensorCores.
            dimension_semantics=("parallel",),
            vmem_limit_bytes=32 * 1024 * 1024,
        ),
    )(x2d)

    # unsqueeze(2).unsqueeze(3): add H and W singleton dims (metadata only).
    return copied.reshape(n, c, 1, 1)


if __name__ == "__main__":
    key = jax.random.PRNGKey(0)

    # Small shape consistent with the module: a batch of vectors (N, C).
    x = jax.random.normal(key, (2, 32), dtype=jnp.float32)
    ref = x[:, :, None, None]

    # Materializing Pallas path.
    out = vec2vol_pallas(x)
    jax.block_until_ready(out)
    assert out.shape == (2, 32, 1, 1), out.shape
    assert out.dtype == x.dtype
    assert jnp.array_equal(out, ref), "pallas path mismatch vs reference unsqueeze"

    # Recommended zero-traffic path (per perf review): pure reshape.
    fast = vec2vol(x)
    assert jnp.array_equal(fast, ref), "fast path mismatch vs reference unsqueeze"

    # Larger shape to exercise the tiled / pipelined / parallel path (grid > 1).
    xl = jax.random.normal(jax.random.PRNGKey(1), (4096, 512), dtype=jnp.float32)
    out_l = vec2vol_pallas(xl)
    jax.block_until_ready(out_l)
    assert out_l.shape == (4096, 512, 1, 1)
    assert jnp.array_equal(out_l, xl[:, :, None, None]), "tiled path mismatch"

    print("KERNEL_OK")
</pallas_src>

<mosaic_0001>
module attributes {stable_mosaic.version = 11 : i64} {
  func.func @_copy_kernel(%arg0: i32, %arg1: memref<2x32xf32, #tpu.memory_space<vmem>>, %arg2: memref<2x32xf32, #tpu.memory_space<vmem>>) attributes {dimension_semantics = [#tpu.dimension_semantics<parallel>], iteration_bounds = array<i64: 1>, scalar_prefetch = 0 : i64, scratch_operands = 0 : i64, tpu.core_type = #tpu.core_type<tc>, window_params = [{transform_indices = @transform_0, window_bounds = array<i64: 2, 32>}, {transform_indices = @transform_1, window_bounds = array<i64: 2, 32>}]} {
    %c0 = arith.constant 0 : index
    %c0_0 = arith.constant 0 : index
    %0 = vector.load %arg1[%c0, %c0_0] : memref<2x32xf32, #tpu.memory_space<vmem>>, vector<2x32xf32>
    %c0_1 = arith.constant 0 : index
    %c0_2 = arith.constant 0 : index
    %1 = vector.load %arg2[%c0_1, %c0_2] : memref<2x32xf32, #tpu.memory_space<vmem>>, vector<2x32xf32>
    tpu.vector_store %arg2[%c0_1, %c0_2], %0 {strides = array<i32>} : memref<2x32xf32, #tpu.memory_space<vmem>>, vector<2x32xf32>,
    return
  }
  func.func @transform_0(%arg0: i32) -> (i32, i32) {
    %c0_i32 = arith.constant 0 : i32
    %c0_i32_0 = arith.constant 0 : i32
    return %arg0, %c0_i32 : i32, i32
  }
  func.func @transform_1(%arg0: i32) -> (i32, i32) {
    %c0_i32 = arith.constant 0 : i32
    %c0_i32_0 = arith.constant 0 : i32
    return %arg0, %c0_i32 : i32, i32
  }
}

</mosaic_0001>

<bundles_post_ra>
// kernel: tpu_custom_call.1
= control target key start
LH: loop header
LB: loop body
LE: loop exit
PB: predicated region body
PF: predicated region fallthrough
CT: control target
= control target key end

     0   :  { %6 = vsyncpa [#allocation3], 0  ;;  %s103_s0 = inlined_call_operand.hbm [shape: f32[2,32], index: 0, kind: input, shape index: {}]   ;;  %s104_s1 = inlined_call_operand.hbm [shape: f32[2,32], index: 1, kind: output, shape index: {}]  }
   0x1   :  { %7 = vsyncpa [#allocation4], 0  ;;  %s85_s6 = smov [#allocation2]  }
   0x2   :  { %s14_s7 = sshll.u32 %s85_s6, 4  ;;  %s15_s7 = int_to_ptr.vmem [resolvable:$true] %s14_s7 }
   0x3   :  { %s49_s8 = scalar_lea.vmem %s15_s7, 32  ;;  %p54_p1 = scmp.lt.s32.totalorder %s15_s7, %s15_s7 }
   0x4   :  { %p50_p0 = scmp.ne.s32.totalorder %s15_s7, %s49_s8  ;;  %p55_p2 = scmp.lt.s32.totalorder %s49_s8, %s49_s8 }
   0x6   :  { %p56_p3 = por %p55_p2, %p54_p1 }
   0x8   :  { %p57_p4 = pnand %p56_p3, %p50_p0 }
   0xa   :  { %60 = shalt.err (!%p57_p4)
}
   0xb   :  { %17 = dma.hbm_to_vmem [thread:$0]  %s103_s0, 32, %s15_s7, [#allocation3]  }
   0xc   :  { %81 = dma.done.wait [#allocation3], 32  }
   0xd   :  { %82 = vsyncadd [#allocation3], 4294967264  ;;  %s86_s11 = smov [#allocation5]   ;;  %vm22_vm0 = vcmask 254976   ;;  %v21_v0 = vld [vmem:[#allocation2] sm:$0x3] }
   0xe   :  { %s30_s12 = sshll.u32 %s86_s11, 4  ;;  %23 = vst.msk [vmem:[#allocation5] sm:$0x3] %vm22_vm0, %v21_v0  ;;  %s31_s12 = int_to_ptr.vmem [resolvable:$true] %s30_s12 }
   0xf   :  { %s61_s13 = scalar_lea.vmem %s31_s12, 32  ;;  %p66_p6 = scmp.lt.s32.totalorder %s31_s12, %s31_s12 }
  0x10   :  { %p62_p5 = scmp.ne.s32.totalorder %s31_s12, %s61_s13  ;;  %p67_p7 = scmp.lt.s32.totalorder %s61_s13, %s61_s13 }
  0x12   :  { %p68_p8 = por %p67_p7, %p66_p6 }
  0x14   :  { %p69_p9 = pnand %p68_p8, %p62_p5 }
  0x16   :  { %72 = shalt.err (!%p69_p9)
}
  0x17   :  { %33 = dma.vmem_to_hbm [thread:$0]  %s31_s12, 32, %s104_s1, [#allocation4]  }
  0x18   :  { %83 = dma.done.wait [#allocation4], 32  }
  0x19   :  { %84 = vsyncadd [#allocation4], 4294967264 }
  0x1a   :  { %37 = vsyncpa [#allocation3], 1 }
  0x1b   :  { %38 = vsyncpa [#allocation4], 1 }

</bundles_post_ra>
